<compile_context>
chip_gen: v6e
topology: v6e:2x2x1
jax: 0.10.0
libtpu: 0.0.40
codegen_flags: <defaults>
</compile_context>

<pallas_src>
import jax
import jax.numpy as jnp
from jax import lax
from jax.experimental import pallas as pl
from jax.experimental.pallas import tpu as pltpu


def _one_hot_kernel(x_ref, o_ref):
    # x_ref: (1, 1, Ts)  integer labels (native dtype, cast in VMEM)
    # o_ref: (1, Tc, Ts) one-hot slab for depth chunk program_id(2)
    tc = o_ref.shape[1]
    class_base = pl.program_id(2) * tc
    labels = x_ref[...].astype(jnp.int32)                              # (1, 1, Ts)
    class_ids = class_base + lax.broadcasted_iota(jnp.int32, (1, tc, 1), 1)
    # Broadcast compare: (1,1,Ts) vs (1,Tc,1) -> (1,Tc,Ts); one compare + cast.
    # Out-of-bounds lanes/rows of the edge tiles are garbage here but are
    # dropped by Pallas at output writeback.
    o_ref[...] = (labels == class_ids).astype(o_ref.dtype)


def _choose_tiles(depth, s, out_elem_bytes):
    """Generation-aware tile selection. Returns (tc, ts, vmem_limit_bytes)."""
    try:
        vmem_cap = getattr(pltpu.get_tpu_info(), "vmem_capacity_bytes", 64 << 20)
    except Exception:
        vmem_cap = 64 << 20
    if vmem_cap >= (100 << 20):
        # v5e / v6e: 128 MiB physical VMEM -> big tiles, fewer grid steps.
        max_tile_bytes = 16 << 20
        vmem_limit = 80 << 20
    else:
        # v7x (64 MiB per TC) or unknown: keep 2x double-buffered output
        # tiles + label tiles comfortably under the scoped limit.
        max_tile_bytes = 8 << 20
        vmem_limit = 40 << 20

    # Depth chunk (sublane dim): the full depth when small (legal even if not
    # a multiple of 8 since it equals the array dim), else a multiple of 8.
    # Kept modest so the tile budget goes to the lane (spatial) dim -> longer
    # contiguous rows in the strided HBM write.
    tc = depth if depth <= 32 else 32

    # Spatial tile (lane dim): multiple of 128, as large as the budget allows.
    # No divisibility requirement — the grid uses cdiv and Pallas masks the
    # ragged edge tile.
    s_ceil = ((s + 127) // 128) * 128
    max_ts = max(128, (max_tile_bytes // (tc * out_elem_bytes)) // 128 * 128)
    ts = min(s_ceil, max_ts)
    return tc, ts, vmem_limit


def one_hot_nchw(x_in, depth, out_dtype=jnp.float32):
    # Input: (N, 1, H, W) integer label map. Output: (N, depth, H, W),
    # exactly One_Hot.forward's permute(0, -1, 1, 2, 3).squeeze(dim=2).float()
    # when out_dtype is float32 (the default).
    n, c, h, w = x_in.shape
    assert c == 1, "One_Hot usage assumes a singleton channel (squeezed at dim=2)"
    assert jnp.issubdtype(x_in.dtype, jnp.integer), "labels must be integer-typed"

    s = h * w
    labels = x_in.reshape(n, 1, s)                         # lane-dense minor dim
    out_bytes = jnp.dtype(out_dtype).itemsize
    tc, ts, vmem_limit = _choose_tiles(depth, s, out_bytes)

    # Depth innermost so the label tile (whose index_map ignores it) stays
    # resident in VMEM across depth chunks.
    grid = (n, pl.cdiv(s, ts), pl.cdiv(depth, tc))

    cost = pl.CostEstimate(
        flops=n * depth * s,
        transcendentals=0,
        bytes_accessed=n * depth * s * out_bytes + n * s * x_in.dtype.itemsize,
    )

    out = pl.pallas_call(
        _one_hot_kernel,
        out_shape=jax.ShapeDtypeStruct((n, depth, s), out_dtype),
        grid_spec=pltpu.PrefetchScalarGridSpec(
            num_scalar_prefetch=0,
            grid=grid,
            in_specs=[pl.BlockSpec((1, 1, ts), lambda b, si, di: (b, 0, si))],
            out_specs=pl.BlockSpec((1, tc, ts), lambda b, si, di: (b, di, si)),
        ),
        compiler_params=pltpu.CompilerParams(
            # Every (b, si, di) writes a distinct output block — no reduction —
            # so all axes are parallel (lets v7x megacore shard over depth too).
            dimension_semantics=("parallel", "parallel", "parallel"),
            vmem_limit_bytes=vmem_limit,
        ),
        cost_estimate=cost,
    )(labels)

    return out.reshape(n, depth, h, w)


def _reference(x, depth, n, h, w):
    # Pure-JAX reference reproducing the PyTorch forward step by step.
    ones = jnp.eye(depth, dtype=jnp.float32)               # self.ones
    ref = ones[x.reshape(-1)].reshape(n, 1, h, w, depth)   # index_select + view
    ref = jnp.transpose(ref, (0, 4, 1, 2, 3))              # permute(0, -1, 1, 2, 3)
    return jnp.squeeze(ref, axis=2).astype(jnp.float32)    # squeeze(dim=2).float()


if __name__ == "__main__":
    key = jax.random.PRNGKey(0)

    # Case 1: spatial size a multiple of 128 (16*16 = 256).
    depth = 4
    N, H, W = 2, 16, 16
    key, k1 = jax.random.split(key)
    x = jax.random.randint(k1, (N, 1, H, W), 0, depth, dtype=jnp.int32)
    out = jax.block_until_ready(one_hot_nchw(x, depth))
    ref = _reference(x, depth, N, H, W)
    assert out.shape == (N, depth, H, W), out.shape
    assert out.dtype == jnp.float32
    assert jnp.array_equal(out, ref)

    # Case 2: ragged spatial size (10*13 = 130, not a multiple of 128) —
    # exercises the cdiv grid / OOB-masked edge tile path (no pad, no slice).
    depth2 = 5
    N2, H2, W2 = 1, 10, 13
    key, k2 = jax.random.split(key)
    x2 = jax.random.randint(k2, (N2, 1, H2, W2), 0, depth2, dtype=jnp.int32)
    out2 = jax.block_until_ready(one_hot_nchw(x2, depth2))
    ref2 = _reference(x2, depth2, N2, H2, W2)
    assert out2.shape == (N2, depth2, H2, W2), out2.shape
    assert jnp.array_equal(out2, ref2)

    # TODO(synk): out-of-range labels (<0 or >=depth) produce an all-zero
    # one-hot row instead of raising like torch index_select would.
    print("KERNEL_OK")
</pallas_src>

<mosaic_0001>
module attributes {stable_mosaic.version = 11 : i64} {
  func.func @_one_hot_kernel(%arg0: i32, %arg1: i32, %arg2: i32, %arg3: memref<1x1x256xi32, #tpu.memory_space<vmem>>, %arg4: memref<1x4x256xf32, #tpu.memory_space<vmem>>) attributes {dimension_semantics = [#tpu.dimension_semantics<parallel>, #tpu.dimension_semantics<parallel>, #tpu.dimension_semantics<parallel>], iteration_bounds = array<i64: 2, 1, 1>, scalar_prefetch = 0 : i64, scratch_operands = 0 : i64, tpu.core_type = #tpu.core_type<tc>, window_params = [{transform_indices = @transform_0, window_bounds = array<i64: 1, 1, 256>}, {transform_indices = @transform_1, window_bounds = array<i64: 1, 4, 256>}]} {
    %c4_i32 = arith.constant 4 : i32
    %0 = arith.muli %arg2, %c4_i32 : i32
    %c0 = arith.constant 0 : index
    %c0_0 = arith.constant 0 : index
    %c0_1 = arith.constant 0 : index
    %1 = vector.load %arg3[%c0, %c0_0, %c0_1] : memref<1x1x256xi32, #tpu.memory_space<vmem>>, vector<1x1x256xi32>
    %2 = tpu.iota {dimensions = array<i32: 1>} : vector<1x4x1xi32>
    %3 = vector.broadcast %0 : i32 to vector<1x4x1xi32>
    %4 = arith.addi %3, %2 : vector<1x4x1xi32>
    %5 = vector.broadcast %1 : vector<1x1x256xi32> to vector<1x4x256xi32>
    %6 = vector.broadcast %4 : vector<1x4x1xi32> to vector<1x4x256xi32>
    %7 = arith.cmpi eq, %5, %6 : vector<1x4x256xi32>
    %8 = arith.extui %7 : vector<1x4x256xi1> to vector<1x4x256xi32>
    %9 = arith.sitofp %8 : vector<1x4x256xi32> to vector<1x4x256xf32>
    %c0_2 = arith.constant 0 : index
    %c0_3 = arith.constant 0 : index
    %c0_4 = arith.constant 0 : index
    %10 = vector.load %arg4[%c0_2, %c0_3, %c0_4] : memref<1x4x256xf32, #tpu.memory_space<vmem>>, vector<1x4x256xf32>
    tpu.vector_store %arg4[%c0_2, %c0_3, %c0_4], %9 {strides = array<i32>} : memref<1x4x256xf32, #tpu.memory_space<vmem>>, vector<1x4x256xf32>,
    return
  }
  func.func @transform_0(%arg0: i32, %arg1: i32, %arg2: i32) -> (i32, i32, i32) {
    %c0_i32 = arith.constant 0 : i32
    %c0_i32_0 = arith.constant 0 : i32
    return %arg0, %c0_i32, %arg1 : i32, i32, i32
  }
  func.func @transform_1(%arg0: i32, %arg1: i32, %arg2: i32) -> (i32, i32, i32) {
    %c0_i32 = arith.constant 0 : i32
    return %arg0, %arg2, %arg1 : i32, i32, i32
  }
}

</mosaic_0001>

<bundles_post_ra>
// kernel: tpu_custom_call.1
= control target key start
LH: loop header
LB: loop body
LE: loop exit
PB: predicated region body
PF: predicated region fallthrough
CT: control target
= control target key end

     0   :  { %6 = vsyncpa [#allocation3], 0  ;;  %s635_s0 = inlined_call_operand.hbm [shape: s32[2,1,256], index: 0, kind: input, shape index: {}]   ;;  %s636_s1 = inlined_call_operand.hbm [shape: f32[2,4,256], index: 1, kind: output, shape index: {}]  }
   0x1   :  { %8 = vsyncpa [#allocation3 + $0x1], 0 }
   0x2   :  { %9 = vsyncpa [#allocation4], 0 }
   0x3   :  { %11 = vsyncpa [#allocation4 + $0x1], 0  ;;  %s500_s6 = smov 0   ;;  %s502_s7 = smov 0  }
   0x4   :  { %s504_s8 = smov 0   ;;  %s506_s9 = smov 0  }
   0x5   :  { %s508_s10 = smov 0   ;;  %s510_s11 = smov 0  }
   0x6 LB: > { %s295_s12 = sadd.s32 4294967295, %s485_s11   ;;  %s296_s13 = sadd.s32 4294967294, %s485_s11   ;;  %s485_s11 = sphi %s510_s11, %s17_s11   ;;  %s481_s10 = sphi %s508_s10, %s648_s10   ;;  %s477_s9 = sphi %s506_s9, %s647_s9   ;;  %s473_s8 = sphi %s504_s8, %s646_s8   ;;  %s469_s7 = sphi %s502_s7, %s645_s7   ;;  %s465_s6 = sphi %s500_s6, %s644_s6  }
   0x7   : > { %s36_s14 = sadd.s32 1, %s481_s10  ;;  %s45_s15 = sadd.s32 1, %s473_s8 }
   0x8   : > { %p38_p0 = scmp.ge.s32.totalorder %s36_s14, 2  ;;  %p52_p1 = scmp.ne.s32.totalorder %s473_s8, %s469_s7 }
   0x9   : > { %p53_p2 = scmp.eq.s32.totalorder %s485_s11, 0  ;;  %p58_p3 = scmp.ne.s32.totalorder %s469_s7, %s465_s6 }
   0xa   : > { %s650_s14 = smov (%p38_p0, %s36_s14), 0  ;;  %p59_p5 = scmp.eq.s32.totalorder %s295_s12, 0 }
   0xb   : > { %p541_p4 = por %p53_p2, %p52_p1  ;;  %s40_s17 = ssub.s32 %s481_s10, %s650_s14 }
   0xc   : > { %p86_p6 = scmp.eq.s32.totalorder %s295_s12, 1  ;;  %p43_p7 = scmp.eq.s32.totalorder %s40_s17, 0 }
   0xd   : > { %p547_p8 = por %p59_p5, %p58_p3  ;;  %p92_p10 = scmp.eq.s32.totalorder %s296_s13, 1 }
   0xe   : > { %p551_p9 = por %p86_p6, %p52_p1  ;;  %p326_p13 = scmp.lt.s32.totalorder %s485_s11, 2 }
   0xf   : > { %s556_s20 = scalar_select %p43_p7, %s473_s8, %s45_s15  }
  0x10   : > { %p558_p11 = por %p92_p10, %p58_p3  ;;  %s112_s22 = sand.u32 1, %s473_s8  }
  0x11   : > { %s299_s23 = sshll.u32 %s112_s22, 1  ;;  %s312_s24 = sshll.u32 %s481_s10, 5 }
  0x12   : > { %s640_s21 = scalar_select %p558_p11, 1, 0 }
  0x13   : > { %s124_s27 = scalar_lea.hbm %s635_s0, %s312_s24  ;;  %s116_s28 = scalar_lea.vmem [#allocation2], %s299_s23 }
  0x14   : > { %s126_s29 = sshll.u32 %s116_s28, 4  ;;  %p571_p0 = pnand %p326_p13, %p541_p4  ;;  %s127_s29 = int_to_ptr.vmem [resolvable:$true] %s126_s29 }
  0x15   : > { %p302_p1 = scmp.ge.s32.totalorder %s485_s11, 1  ;;  %p131_p2 = scmp.lt.s32.totalorder %s485_s11, 3 }
  0x16   : > { %s113_s2 = scalar_lea.sflag [#allocation3], %s112_s22  ;;  %p379_p3 = pneg %p571_p0 }
  0x17   : > { %s390_s3 = scalar_lea.vmem %s127_s29, 32  ;;  %s487_s4 = smov [#allocation2]  }
  0x18   : > { %p391_p5 = scmp.ne.s32.totalorder %s127_s29, %s390_s3  ;;  %s395_s5 = sshll.u32 %s487_s4, 4  ;;  %s396_s5 = int_to_ptr.vmem [resolvable:$false] %s395_s5 }
  0x19   : > { %s397_s12 = scalar_lea.vmem %s396_s5, 64  ;;  %p398_p10 = scmp.lt.s32.totalorder %s127_s29, %s396_s5 }
  0x1a   : > { %p393_p6 = pnand %p391_p5, %p379_p3  ;;  %p399_p12 = scmp.lt.s32.totalorder %s397_s12, %s390_s3 }
  0x1c   : > { %p394_p7 = pneg %p393_p6  ;;  %p400_p4 = por %p399_p12, %p398_p10 }
  0x1e   : > { %p401_p13 = pnand %p400_p4, %p394_p7 }
  0x20   : > { %404 = shalt.err (!%p401_p13)
}
  0x21   : > { %321 = dma.hbm_to_vmem [thread:$0]  (!%p571_p0), %s124_s27, 32, %s127_s29, %s113_s2  }
  0x22   : > { %p132_p11 = pnand %p302_p1, %p131_p2 }
  0x23   : > { %s586_s13 = sand.u32 (!%p132_p11), 1, %s469_s7  }
  0x24   : > { %135 = sbr.rel (%p132_p11) target bundleno = 67 (0x43), region = 24  ;;  %s303_s15 = sshll.u32 (!%p132_p11), %s586_s13, 1 }
  0x25   : > { %s138_s16 = scalar_lea.sflag (!%p132_p11), [#allocation3], %s586_s13  ;;  %s141_s17 = scalar_lea.vmem (!%p132_p11), [#allocation2], %s303_s15 }
  0x29   : > { %456 = dma.done.wait (%p547_p8), %s138_s16, 32  }
  0x2a   : > { %458 = vsyncadd (%p547_p8), %s138_s16, 4294967264  ;;  %v164_v0 = vlaneseq  ;;  %s304_s22 = sshll.u32 %s586_s13, 3  ;;  %v163_v4 = vld [vmem:[%s141_s17] sm:$0x3]  ;;  %s313_s25 = sshll.u32 %s477_s9, 7  ;;  %v488_v7 = vmov 0.0  }
  0x2b   : > { %s159_s23 = scalar_lea.vmem [#allocation5], %s304_s22  ;;  %s204_s27 = scalar_lea.hbm %s636_s1, %s313_s25 }
  0x2c   : > { %v165_v1 = vshrl.u32 %v164_v0, 7  ;;  %s206_s24 = sshll.u32 %s159_s23, 4  ;;  %s188_s28 = scalar_lea.sflag [#allocation4], %s586_s13  ;;  %s207_s24 = int_to_ptr.vmem [resolvable:$true] %s206_s24 }
  0x2d   : > { %s405_s29 = scalar_lea.vmem %s207_s24, 128  ;;  %s489_s30 = smov [#allocation5]  }
  0x2e   : > { %v170_v2 = vsub.s32 0, %v165_v1  ;;  %v174_v3 = vsub.s32 1, %v165_v1  ;;  %p406_p8 = scmp.ne.s32.totalorder %s207_s24, %s405_s29  ;;  %s409_s9 = sshll.u32 %s489_s30, 4  ;;  %s410_s9 = int_to_ptr.vmem [resolvable:$false] %s409_s9 }
  0x2f   : > { %s411_s2 = scalar_lea.vmem %s410_s9, 256  ;;  %p412_p0 = scmp.lt.s32.totalorder %s207_s24, %s410_s9 }
  0x30   : > { %v171_v5 = vrot.slane %v163_v4, %v170_v2  ;;  %v175_v6 = vrot.slane %v163_v4, %v174_v3  ;;  %p407_p11 = pnand %p406_p8, %p551_p9  ;;  %p413_p1 = scmp.lt.s32.totalorder %s411_s2, %s405_s29 }
  0x32   : > { %vm176_vm0 = vcmp.eq.s32.totalorder %v171_v5, %v165_v1  ;;  %vm177_vm1 = vcmp.eq.s32.totalorder %v175_v6, %v165_v1  ;;  %p408_p12 = pneg %p407_p11  ;;  %p414_p2 = por %p413_p1, %p412_p0 }
  0x33   : > { %v305_v8 = vsel %vm176_vm0, 1.0, %v488_v7  ;;  %v306_v9 = vsel %vm177_vm1, 1.0, %v488_v7 }
  0x34   : > { %v184_v10 = vcombine.low %v305_v8, %v306_v9  ;;  %p415_p3 = pnand %p414_p2, %p408_p12 }
  0x36   : > { %186 = vst [vmem:[%s159_s23] sm:$0xff] %v184_v10 }
  0x37   : > { %418 = shalt.err (!%p415_p3)
}
  0x38   : > { %s419_s3 = scalar_lea.hbm %s204_s27, 128  ;;  %s423_s12 = scalar_lea.hbm %s636_s1, 256 }
  0x39   : > { %p420_p5 = scmp.ne.s32.totalorder %s204_s27, %s419_s3  ;;  %p424_p10 = scmp.lt.s32.totalorder %s204_s27, %s636_s1 }
  0x3a   : > { %p425_p4 = scmp.lt.s32.totalorder %s423_s12, %s419_s3 }
  0x3b   : > { %p421_p6 = pnand %p420_p5, %p551_p9 }
  0x3c   : > { %p426_p13 = por %p425_p4, %p424_p10 }
  0x3d   : > { %p422_p7 = pneg %p421_p6 }
  0x3f   : > { %p427_p8 = pnand %p426_p13, %p422_p7 }
  0x41   : > { %430 = shalt.err (!%p427_p8)
}
  0x42   : > { %316 = dma.vmem_to_hbm [thread:$0]  (%p551_p9), %s207_s24, 128, %s204_s27, %s188_s28  }
  0x43 PF: > { %s218_s16 = sand.u32 1, %s465_s6   ;;  %p642_p11 = scmp.ne.s32.totalorder %s640_s21, 0 }
  0x44   : > { %p643_p12 = scmp.ge.s32.totalorder %s485_s11, 2  ;;  %s219_s17 = scalar_lea.sflag [#allocation4], %s218_s16 }
  0x46   : > { %p323_p0 = pnand %p643_p12, %p642_p11 }
  0x48   : > { %p324_p1 = pneg %p323_p0 }
  0x4a   : > { %460 = dma.done.wait (%p324_p1), %s219_s17, 128  }
  0x4b   : > { %462 = vsyncadd (%p324_p1), %s219_s17, 4294967168  ;;  %s17_s11 = sadd.s32 1, %s485_s11   ;;  %s644_s6 = smov %s469_s7 }
  0x4c   : > { %p14_p2 = scmp.ge.s32.totalorder %s17_s11, 4   ;;  %s645_s7 = smov %s473_s8 }
  0x4d   : > { %s646_s8 = smov %s556_s20  ;;  %s647_s9 = smov %s481_s10 }
  0x4e   : > { %s648_s10 = smov %s650_s14  ;;  %16 = sbr.rel (!%p14_p2) target bundleno = 6 (0x6), region = 69 }
  0x53   :  { %224 = vsyncpa [#allocation3], 1 }
  0x54   :  { %226 = vsyncpa [#allocation3 + $0x1], 1 }
  0x55   :  { %227 = vsyncpa [#allocation4], 1 }
  0x56   :  { %229 = vsyncpa [#allocation4 + $0x1], 1 }

</bundles_post_ra>
